<compile_context>
chip_gen: v7x
topology: tpu7x:2x2x1
jax: 0.10.0
libtpu: 0.0.40
codegen_flags: <defaults>
</compile_context>

<pallas_src>
import functools

import jax
import jax.numpy as jnp
from jax.experimental import pallas as pl
from jax.experimental.pallas import tpu as pltpu


def _round_up(x: int, m: int) -> int:
    return ((x + m - 1) // m) * m


def _device_kind() -> str:
    try:
        return jax.devices()[0].device_kind.lower()
    except Exception:
        return ""


def _default_node_tile() -> int:
    # >= ~2 MiB of useful DMA (20 B/node) per grid step; >= ~5 MiB on v7x
    # (3.2 TB/s HBM makes per-step overhead proportionally worse).
    return 262144 if "v7" in _device_kind() else 131072


def _default_num_splits() -> int:
    # v7x has 2 TensorCores per chip; split the node range across them.
    return 2 if "v7" in _device_kind() else 1


def _polarization_kernel(packed_ref, out_ref, *, num_graphs: int):
    """One node tile of pol[s, :, g] = sum_i q_i * r[:, i] * [batch_i == g].

    Lane-major layout: the node axis is the 128-lane (last) dimension of the
    single packed input block.  The tiny (1, 3, num_graphs) output block is
    resident across the reduction grid axis and acts as the f32 accumulator.
    """
    t = pl.program_id(1)  # node-tile (reduction) axis

    @pl.when(t == 0)
    def _init():
        out_ref[...] = jnp.zeros_like(out_ref)

    data = packed_ref[...]            # (5, NT) f32
    r = data[0:3, :]                  # (3, NT) positions (transposed)
    q = data[3:4, :]                  # (1, NT) charges (global mean already removed)
    b = data[4:5, :]                  # (1, NT) graph ids as exact small-int floats

    qr = q * r                        # (3, NT) weighted positions

    # Masked VPU/XLU lane-reduce per graph.  Static unrolled loop keeps the
    # live set at a single (3, NT) tile: no (3, B, NT) contrib tensor and no
    # (B, NT) one-hot, so the large node tiles above fit comfortably in VMEM.
    # Padded nodes have batch id == num_graphs (never matched) and q == 0.
    # TODO(synk): for very large num_graphs, replace this unrolled loop with a
    # scalar-prefetch per-graph tiling (sorted batch ids, no masking at all).
    cols = []
    for g in range(num_graphs):
        mask = b == jnp.float32(g)                                  # (1, NT)
        cols.append(jnp.sum(jnp.where(mask, qr, 0.0),
                            axis=-1, keepdims=True))                # (3, 1)
    partial = jnp.concatenate(cols, axis=1)                         # (3, B)

    out_ref[...] += partial[None, :, :]


def polarization_forward(positions, q, batch, cell, *, num_graphs,
                         remove_mean=True, pbc=False,
                         n_nodes_last_graph=None,
                         node_tile=None, num_splits=None):
    """JAX/Pallas equivalent of Polarization.forward (pbc=False path).

    Returns dict with 'polarization' (B, 3) f32 and 'phase' (1, n_last, 3) c64.
    """
    assert not pbc, "only the non-periodic (pbc=False) branch is implemented"
    n, d = positions.shape
    assert d == 3, "r dimension error"
    assert q.shape[0] == n, "q dimension error"
    # Graph ids are carried as float32 inside the packed block; exact up to 2^24.
    assert num_graphs < (1 << 24), "num_graphs too large for float32 id encoding"

    if node_tile is None:
        node_tile = _default_node_tile()
    if num_splits is None:
        num_splits = _default_num_splits()
    if n <= node_tile:
        num_splits = 1  # tiny inputs: no benefit from splitting across cores

    # Charges: global mean removal fused into the (single) wrapper packing pass.
    q_row = jnp.reshape(q, (1, n)).astype(jnp.float32)               # (1, N)
    if remove_mean:
        q_row = q_row - jnp.mean(q_row, axis=1, keepdims=True)

    # Lane-major layout: node axis last.
    r_t = jnp.transpose(positions.astype(jnp.float32))               # (3, N)
    b_row = jnp.reshape(jnp.asarray(batch, jnp.int32), (1, n))       # (1, N)

    # Node tile: multiple of 128 lanes, capped by the per-split extent.
    nt = min(_round_up(node_tile, 128), _round_up(pl.cdiv(n, num_splits), 128))
    tiles_per_split = pl.cdiv(n, num_splits * nt)
    n_pad = num_splits * tiles_per_split * nt
    pad = n_pad - n
    if pad:
        # Padded nodes: r = 0, q = 0, batch id = num_graphs (out of range).
        r_t = jnp.pad(r_t, ((0, 0), (0, pad)))
        q_row = jnp.pad(q_row, ((0, 0), (0, pad)))
        b_row = jnp.pad(b_row, ((0, 0), (0, pad)), constant_values=num_graphs)

    # One packed (5, N) block: one DMA per grid step, 8-sublane padding paid once.
    packed = jnp.concatenate([r_t, q_row, b_row.astype(jnp.float32)], axis=0)

    block_bytes = 8 * nt * 4  # (5 -> 8 sublane-padded, nt) f32 in VMEM
    vmem_limit = int(min(48 * 2 ** 20, max(32 * 2 ** 20, 3 * block_bytes)))

    cost = pl.CostEstimate(
        flops=2 * 3 * n_pad * (num_graphs + 1),
        transcendentals=0,
        bytes_accessed=5 * n_pad * 4 + num_splits * 3 * num_graphs * 4)

    kernel = functools.partial(_polarization_kernel, num_graphs=num_graphs)

    pol_parts = pl.pallas_call(
        kernel,
        out_shape=jax.ShapeDtypeStruct((num_splits, 3, num_graphs), jnp.float32),
        grid=(num_splits, tiles_per_split),
        in_specs=[
            pl.BlockSpec((5, nt),
                         lambda s, t: (0, s * tiles_per_split + t)),
        ],
        out_specs=pl.BlockSpec((1, 3, num_graphs), lambda s, t: (s, 0, 0)),
        compiler_params=pltpu.CompilerParams(
            dimension_semantics=("parallel", "arbitrary"),
            vmem_limit_bytes=vmem_limit),
        cost_estimate=cost,
    )(packed)

    pol = jnp.sum(pol_parts, axis=0).T                               # (B, 3)

    # pbc=False branch: phase is all-zero complex64 shaped like the last
    # graph's positions.  Pass n_nodes_last_graph statically to stay jittable.
    if n_nodes_last_graph is None:
        # TODO(synk): data-dependent output shape; host fallback is un-jittable.
        batch_np = jax.device_get(jnp.asarray(batch))
        n_nodes_last_graph = int((batch_np == batch_np.max()).sum())
    phase = jnp.zeros((1, n_nodes_last_graph, 3), dtype=jnp.complex64)

    # box diagonal as in the module (glue; unused when pbc=False)
    _box = cell.reshape(-1, 3, 3).diagonal(axis1=-2, axis2=-1)

    return {"polarization": pol, "phase": phase}


def _reference(positions, q, batch, num_graphs, remove_mean=True):
    qq = q.reshape(-1, 1).astype(jnp.float32)
    if remove_mean:
        qq = qq - jnp.mean(qq, axis=0, keepdims=True)
    qr = qq * positions.astype(jnp.float32)
    seg = jax.nn.one_hot(batch, num_graphs, dtype=jnp.float32)  # (N, B)
    return seg.T @ qr


if __name__ == "__main__":
    key = jax.random.PRNGKey(0)
    k1, k2 = jax.random.split(key)

    num_graphs = 2
    nodes_per_graph = 8
    n = num_graphs * nodes_per_graph

    positions = jax.random.normal(k1, (n, 3), dtype=jnp.float32) * 2.0
    q = jax.random.normal(k2, (n,), dtype=jnp.float32)
    batch = jnp.repeat(jnp.arange(num_graphs, dtype=jnp.int32), nodes_per_graph)
    cell = jnp.zeros((num_graphs, 3, 3), dtype=jnp.float32)  # pbc=False -> zero cells

    out = polarization_forward(positions, q, batch, cell,
                               num_graphs=num_graphs,
                               remove_mean=True, pbc=False,
                               n_nodes_last_graph=nodes_per_graph)
    pol = jax.block_until_ready(out["polarization"])
    _ = jax.block_until_ready(out["phase"])

    ref = _reference(positions, q, batch, num_graphs)
    assert pol.shape == (num_graphs, 3)
    assert out["phase"].shape == (1, nodes_per_graph, 3)
    assert out["phase"].dtype == jnp.complex64
    assert jnp.allclose(pol, ref, atol=1e-5, rtol=1e-5)

    print("KERNEL_OK")
</pallas_src>

<mosaic_0001>
module attributes {stable_mosaic.version = 11 : i64} {
  func.func @_polarization_kernel(%arg0: i32, %arg1: i32, %arg2: memref<5x128xf32, #tpu.memory_space<vmem>>, %arg3: memref<1x3x2xf32, #tpu.memory_space<vmem>>) attributes {dimension_semantics = [#tpu.dimension_semantics<parallel>, #tpu.dimension_semantics<arbitrary>], iteration_bounds = array<i64: 1, 1>, scalar_prefetch = 0 : i64, scratch_operands = 0 : i64, tpu.core_type = #tpu.core_type<tc>, window_params = [{transform_indices = @transform_0, window_bounds = array<i64: 5, 128>}, {transform_indices = @transform_1, window_bounds = array<i64: 1, 3, 2>}]} {
    %c0_i32 = arith.constant 0 : i32
    %0 = arith.cmpi eq, %arg1, %c0_i32 : i32
    %1 = arith.extui %0 : i1 to i32
    %c0_i32_0 = arith.constant 0 : i32
    %2 = arith.cmpi ne, %1, %c0_i32_0 : i32
    scf.if %2 {
      %cst_13 = arith.constant 0.000000e+00 : f32
      %30 = vector.broadcast %cst_13 : f32 to vector<1x3x2xf32>
      %c0_14 = arith.constant 0 : index
      %c0_15 = arith.constant 0 : index
      %c0_16 = arith.constant 0 : index
      %31 = vector.load %arg3[%c0_14, %c0_15, %c0_16] : memref<1x3x2xf32, #tpu.memory_space<vmem>>, vector<1x3x2xf32>
      tpu.vector_store %arg3[%c0_14, %c0_15, %c0_16], %30 {strides = array<i32>} : memref<1x3x2xf32, #tpu.memory_space<vmem>>, vector<1x3x2xf32>,
    } else {
    }
    %c0 = arith.constant 0 : index
    %c0_1 = arith.constant 0 : index
    %3 = vector.load %arg2[%c0, %c0_1] : memref<5x128xf32, #tpu.memory_space<vmem>>, vector<5x128xf32>
    %4 = vector.extract_strided_slice %3 {offsets = [0, 0], sizes = [3, 128], strides = [1, 1]} : vector<5x128xf32> to vector<3x128xf32>
    %5 = vector.extract_strided_slice %3 {offsets = [3, 0], sizes = [1, 128], strides = [1, 1]} : vector<5x128xf32> to vector<1x128xf32>
    %6 = vector.extract_strided_slice %3 {offsets = [4, 0], sizes = [1, 128], strides = [1, 1]} : vector<5x128xf32> to vector<1x128xf32>
    %7 = vector.broadcast %5 : vector<1x128xf32> to vector<3x128xf32>
    %8 = arith.mulf %7, %4 : vector<3x128xf32>
    %cst = arith.constant 0.000000e+00 : f32
    %9 = vector.broadcast %cst : f32 to vector<1x128xf32>
    %10 = arith.cmpf oeq, %6, %9 : vector<1x128xf32>
    %cst_2 = arith.constant 0.000000e+00 : f32
    %11 = vector.shape_cast %10 : vector<1x128xi1> to vector<1x128xi1>
    %12 = vector.broadcast %11 : vector<1x128xi1> to vector<3x128xi1>
    %13 = vector.broadcast %cst_2 : f32 to vector<3x128xf32>
    %14 = arith.select %12, %8, %13 : vector<3x128xi1>, vector<3x128xf32>
    %cst_3 = arith.constant dense<0.000000e+00> : vector<3xf32>
    %15 = vector.multi_reduction <add>, %14, %cst_3 [1] : vector<3x128xf32> to vector<3xf32>
    %16 = vector.shape_cast %15 : vector<3xf32> to vector<3x1xf32>
    %cst_4 = arith.constant 1.000000e+00 : f32
    %17 = vector.broadcast %cst_4 : f32 to vector<1x128xf32>
    %18 = arith.cmpf oeq, %6, %17 : vector<1x128xf32>
    %cst_5 = arith.constant 0.000000e+00 : f32
    %19 = vector.shape_cast %18 : vector<1x128xi1> to vector<1x128xi1>
    %20 = vector.broadcast %19 : vector<1x128xi1> to vector<3x128xi1>
    %21 = vector.broadcast %cst_5 : f32 to vector<3x128xf32>
    %22 = arith.select %20, %8, %21 : vector<3x128xi1>, vector<3x128xf32>
    %cst_6 = arith.constant dense<0.000000e+00> : vector<3xf32>
    %23 = vector.multi_reduction <add>, %22, %cst_6 [1] : vector<3x128xf32> to vector<3xf32>
    %24 = vector.shape_cast %23 : vector<3xf32> to vector<3x1xf32>
    %25 = tpu.concatenate %16, %24 in 1 : vector<3x1xf32>, vector<3x1xf32> -> vector<3x2xf32>
    %c0_7 = arith.constant 0 : index
    %c0_8 = arith.constant 0 : index
    %c0_9 = arith.constant 0 : index
    %26 = vector.load %arg3[%c0_7, %c0_8, %c0_9] : memref<1x3x2xf32, #tpu.memory_space<vmem>>, vector<1x3x2xf32>
    %27 = vector.shape_cast %25 : vector<3x2xf32> to vector<1x3x2xf32>
    %28 = arith.addf %26, %27 : vector<1x3x2xf32>
    %c0_10 = arith.constant 0 : index
    %c0_11 = arith.constant 0 : index
    %c0_12 = arith.constant 0 : index
    %29 = vector.load %arg3[%c0_10, %c0_11, %c0_12] : memref<1x3x2xf32, #tpu.memory_space<vmem>>, vector<1x3x2xf32>
    tpu.vector_store %arg3[%c0_10, %c0_11, %c0_12], %28 {strides = array<i32>} : memref<1x3x2xf32, #tpu.memory_space<vmem>>, vector<1x3x2xf32>,
    return
  }
  func.func @transform_0(%arg0: i32, %arg1: i32) -> (i32, i32) {
    %c1_i32 = arith.constant 1 : i32
    %0 = arith.muli %arg0, %c1_i32 : i32
    %1 = arith.addi %0, %arg1 : i32
    %c0_i32 = arith.constant 0 : i32
    %c0_i32_0 = arith.constant 0 : i32
    return %c0_i32, %1 : i32, i32
  }
  func.func @transform_1(%arg0: i32, %arg1: i32) -> (i32, i32, i32) {
    %c0_i32 = arith.constant 0 : i32
    %c0_i32_0 = arith.constant 0 : i32
    %c0_i32_1 = arith.constant 0 : i32
    return %arg0, %c0_i32, %c0_i32_0 : i32, i32, i32
  }
}

</mosaic_0001>

<bundles_post_ra>
// kernel: tpu_custom_call.1
= control target key start
LH: loop header
LB: loop body
LE: loop exit
PB: predicated region body
PF: predicated region fallthrough
CT: control target
= control target key end

     0   :  { %6 = vsyncpa [#allocation3], 0  ;;  %s97_s6 = smov [#allocation2]   ;;  %s133_s0 = inlined_call_operand.hbm [shape: f32[5,128], index: 0, kind: input, shape index: {}]   ;;  %s134_s1 = inlined_call_operand.vmem [shape: f32[1,3,2], index: 1, kind: output, shape index: {}]  }
   0x1   :  { %s16_s7 = sshll.u32 %s97_s6, 4  ;;  %s73_s10 = scalar_lea.hbm %s133_s0, 128  ;;  %s17_s7 = int_to_ptr.vmem [resolvable:$true] %s16_s7 }
   0x2   :  { %p74_p0 = scmp.ne.s32.totalorder %s133_s0, %s73_s10  ;;  %p77_p1 = scmp.lt.u32.totalorder %s73_s10, %s133_s0 }
   0x4   :  { %p79_p2 = pnand %p77_p1, %p74_p0 }
   0x6   :  { %82 = shalt.err (!%p79_p2)
}
   0x7   :  { %s83_s15 = scalar_lea.vmem %s17_s7, 128  ;;  %p88_p4 = scmp.lt.s32.totalorder %s17_s7, %s17_s7 }
   0x8   :  { %p84_p3 = scmp.ne.s32.totalorder %s17_s7, %s83_s15  ;;  %p89_p5 = scmp.lt.s32.totalorder %s83_s15, %s83_s15 }
   0xa   :  { %p90_p6 = por %p89_p5, %p88_p4 }
   0xc   :  { %p91_p7 = pnand %p90_p6, %p84_p3 }
   0xe   :  { %94 = shalt.err (!%p91_p7)
}
   0xf   :  { %19 = dma.hbm_to_vmem [thread:$0]  %s133_s0, 128, %s17_s7, [#allocation3]  }
  0x10   :  { %95 = dma.done.wait [#allocation3], 128  }
  0x11   :  { %96 = vsyncadd [#allocation3], 4294967168  ;;  %vm28_vm0 = vcmask 10240   ;;  %v31_v0 = vlaneseq  ;;  %v98_v1 = vmov 0.0   ;;  %v30_v5 = vld [vmem:[#allocation2] sm:$0x1f] }
  0x12   :  { %29 = vst.msk [vmem:[%s134_s1] sm:$0x7] %vm28_vm0, %v98_v1  ;;  %vm36_vm1 = vcmp.eq.f32.partialorder %v30_v5, 0.0  ;;  %vm48_vm2 = vcmp.eq.f32.partialorder %v30_v5, 1.0  ;;  %v99_v7 = vmov 0   ;;  %vm44_vm3 = vcmask 1042432  }
  0x13   :  { %v32_v2 = vshrl.u32 %v31_v0, 7  ;;  %v37_v8 = vsel %vm36_vm1, 1, %v99_v7  ;;  %v49_v9 = vsel %vm48_vm2, 1, %v99_v7  ;;  %vm59_vm6 = vcmask 7168  }
  0x15   :  { %v33_v3 = vsub.s32 3, %v32_v2  ;;  %v40_v4 = vsub.s32 4, %v32_v2 }
  0x17   :  { %v34_v6 = vrot.slane %v30_v5, %v33_v3  ;;  %v41_v11 = vrot.slane %v37_v8, %v40_v4  ;;  %v53_v12 = vrot.slane %v49_v9, %v40_v4 }
  0x19   :  { %v35_v10 = vmul.f32 %v34_v6, %v30_v5  ;;  %vm42_vm4 = vcmp.eq.s32.totalorder %v41_v11, 1  ;;  %vm54_vm5 = vcmp.eq.s32.totalorder %v53_v12, 1  ;;  %v61_v18 = vld [vmem:[%s134_s1] sm:$0x7] }
  0x1b   :  { %v43_v13 = vsel %vm42_vm4, %v35_v10, 0.0  ;;  %v55_v14 = vsel %vm54_vm5, %v35_v10, 0.0 }
  0x1c   :  { %v45_v15 = vsel %vm44_vm3, %v43_v13, 0.0  ;;  %v56_v16 = vsel %vm44_vm3, %v55_v14, 0.0 }
  0x1d   :  { %46 = vadd.xlane.f32.xlu0 %v45_v15 }
  0x21   :  { %57 = vadd.xlane.f32.xlu0 %v56_v16 }
  0xaa   :  { %v47_v17 = vpop.xlane.xlu0 %46 }
  0xae   :  { %v58_v19 = vpop.xlane.xlu0 %57 }
  0xaf   :  { %v60_v20 = vsel %vm59_vm6, %v47_v17, %v58_v19 }
  0xb0   :  { %v62_v21 = vadd.f32 %v61_v18, %v60_v20 }
  0xb2   :  { %64 = vst.msk [vmem:[%s134_s1] sm:$0x7] %vm28_vm0, %v62_v21 }
  0xb3   :  { %69 = vsyncpa [#allocation3], 1 }

</bundles_post_ra>
